<compile_context>
chip_gen: v5e
topology: v5e:2x2
jax: 0.10.0
libtpu: 0.0.40
codegen_flags: <defaults>
</compile_context>

<pallas_src>
import jax
import jax.numpy as jnp
from jax.experimental import pallas as pl
from jax.experimental.pallas import tpu as pltpu


LANE = 128      # lane width / MXU N & K alignment
SUBLANE = 16    # bf16 sublane packing -> batch-tile granularity


def _round_up(x, m):
    return ((x + m - 1) // m) * m


# --------------------------- kernels ---------------------------------------

def _fused_kernel(x1_ref, x2_ref, wa_ref, wb_ref, b_ref, out_ref):
    """Affine-fused forward for one batch tile.

    x1_ref, x2_ref : (TB, Fp)  original-dtype flattened inputs (cast here)
    wa_ref, wb_ref : (Fp, Cp)  bf16  W1^T @ W3[:, :H].T / W1^T @ W3[:, H:].T
    b_ref          : (1, Cp)   f32   folded bias
    out_ref        : (TB, Cp)  f32   logits (lane-padded)
    """
    cdt = wa_ref.dtype
    acc = jnp.dot(x1_ref[...].astype(cdt), wa_ref[...],
                  preferred_element_type=jnp.float32)
    acc = acc + jnp.dot(x2_ref[...].astype(cdt), wb_ref[...],
                        preferred_element_type=jnp.float32)
    out_ref[...] = (acc + b_ref[...]).astype(out_ref.dtype)


def _two_stage_kernel(x1_ref, x2_ref, w1_ref, b1_ref, w3a_ref, w3b_ref, b3_ref,
                      out_ref):
    """Un-fused forward (used when Cp > Hp, or for a future training mode).

    Two dots against the same resident W1 — no in-kernel sublane concat
    (which materialized a (2*TB, F) VMEM copy without improving MXU occupancy).
    """
    cdt = w1_ref.dtype
    y1 = jnp.dot(x1_ref[...].astype(cdt), w1_ref[...],
                 preferred_element_type=jnp.float32) + b1_ref[...]
    y2 = jnp.dot(x2_ref[...].astype(cdt), w1_ref[...],
                 preferred_element_type=jnp.float32) + b1_ref[...]
    # act = Identity; dropout is identity at inference.
    # TODO(synk): training-mode dropout (Bernoulli mask via pltpu.prng_*) and
    # configurable act_func are not implemented.
    logits = (jnp.dot(y1.astype(cdt), w3a_ref[...],
                      preferred_element_type=jnp.float32)
              + jnp.dot(y2.astype(cdt), w3b_ref[...],
                        preferred_element_type=jnp.float32)
              + b3_ref[...])
    out_ref[...] = logits.astype(out_ref.dtype)


# --------------------------- weight prep (one-time) -------------------------

def prepare_params(params, compute_dtype=jnp.bfloat16, fuse=None):
    """One-time weight prep (do NOT call per forward step).

    PyTorch nn.Linear stores W as (out, in); we transpose to (in, out), split
    lin_3 into its y1/y2 halves, zero-pad F/H/C up to multiples of 128, and
    cast matmul operands to bf16 (biases stay f32, added to f32 accumulators).

    If `fuse` (default: Cp <= Hp), lin_1 is algebraically folded into lin_3 —
    valid because act=Identity and dropout is identity at eval.
    """
    w1 = params["w1"].astype(jnp.float32)   # (H, F)
    b1 = params["b1"].astype(jnp.float32)   # (H,)
    w3 = params["w3"].astype(jnp.float32)   # (C, 2H)
    b3 = params["b3"].astype(jnp.float32)   # (C,)
    H, F = w1.shape
    C = w3.shape[0]
    Fp, Hp, Cp = _round_up(F, LANE), _round_up(H, LANE), _round_up(C, LANE)
    if fuse is None:
        fuse = Cp <= Hp

    w3_t = w3.T                  # (2H, C)
    w3a_t = w3_t[:H]             # (H, C)  applied to y1
    w3b_t = w3_t[H:]             # (H, C)  applied to y2

    out = {"hidden": H, "n_classes": C, "in_features": F,
           "Fp": Fp, "Hp": Hp, "Cp": Cp, "fused": bool(fuse),
           "compute_dtype": compute_dtype}
    if fuse:
        wa = w1.T @ w3a_t                              # (F, C), f32 pre-contraction
        wb = w1.T @ w3b_t
        bf = b1 @ w3a_t + b1 @ w3b_t + b3              # (C,)
        out["wa"] = jnp.zeros((Fp, Cp), compute_dtype).at[:F, :C].set(
            wa.astype(compute_dtype))
        out["wb"] = jnp.zeros((Fp, Cp), compute_dtype).at[:F, :C].set(
            wb.astype(compute_dtype))
        out["b"] = jnp.zeros((1, Cp), jnp.float32).at[:, :C].set(bf)
    else:
        out["w1_t"] = jnp.zeros((Fp, Hp), compute_dtype).at[:F, :H].set(
            w1.T.astype(compute_dtype))
        out["b1"] = jnp.zeros((1, Hp), jnp.float32).at[:, :H].set(b1)
        out["w3a"] = jnp.zeros((Hp, Cp), compute_dtype).at[:H, :C].set(
            w3a_t.astype(compute_dtype))
        out["w3b"] = jnp.zeros((Hp, Cp), compute_dtype).at[:H, :C].set(
            w3b_t.astype(compute_dtype))
        out["b3"] = jnp.zeros((1, Cp), jnp.float32).at[:, :C].set(b3)
    return out


# --------------------------- wrapper ----------------------------------------

def _vmem_budget_bytes():
    """~80% of physical VMEM on this generation (v7x 64 MiB vs v5e/v6e 128 MiB)."""
    try:
        cap = int(pltpu.get_tpu_info().vmem_capacity_bytes)
    except Exception:
        cap = 64 * 1024 * 1024          # conservative fallback (v7x)
    return int(0.80 * cap)


def dummy_multimodal_dense2_forward(x1, x2, prepped, *, batch_tile=512):
    """JAX wrapper. x1: (B, N1, D1), x2: (B, N2, D2)."""
    B = x1.shape[0]
    x_item = jnp.dtype(x1.dtype).itemsize
    cdt_item = jnp.dtype(prepped["compute_dtype"]).itemsize
    F = prepped["in_features"]
    Fp, Hp, Cp = prepped["Fp"], prepped["Hp"], prepped["Cp"]
    C = prepped["n_classes"]
    fused = prepped["fused"]

    x1_flat = x1.reshape(B, -1)
    x2_flat = x2.reshape(B, -1)
    assert x1_flat.shape[1] == F and x2_flat.shape[1] == F, (
        "forward applies lin_1 to both inputs; flattened dims must match lin_1")

    # -- VMEM footprint model -> derive batch tile TB -------------------------
    if fused:
        weight_bytes = 2 * Fp * Cp * cdt_item + Cp * 4        # single-buffered
        per_row = (2 * 2 * Fp * x_item     # x1/x2 tiles, double-buffered
                   + 2 * Fp * cdt_item     # in-kernel bf16 copies
                   + 2 * Cp * 4            # output tile, double-buffered
                   + Cp * 4)               # f32 accumulator
    else:
        weight_bytes = (Fp * Hp + 2 * Hp * Cp) * cdt_item + (Hp + Cp) * 4
        per_row = (2 * 2 * Fp * x_item + 2 * Fp * cdt_item
                   + 2 * Hp * 4 + 2 * Hp * cdt_item
                   + 2 * Cp * 4 + Cp * 4)

    budget = _vmem_budget_bytes()
    if budget > weight_bytes:
        tb_fit = max(SUBLANE, ((budget - weight_bytes) // per_row)
                     // SUBLANE * SUBLANE)
    else:
        tb_fit = SUBLANE
    # TODO(synk): if even TB=16 does not fit (very large F), add a K(F) grid
    # axis with an f32 accumulator scratch instead of under-requesting VMEM.
    TB = min(_round_up(batch_tile, SUBLANE), _round_up(B, SUBLANE), tb_fit)
    # Aim for >=2 grid steps so the "parallel" batch axis can shard across
    # v7x's 2 TensorCores (one extra ~0.35us step on 1-TC chips is negligible).
    if B >= 2 * SUBLANE:
        TB = min(TB, _round_up(pl.cdiv(B, 2), SUBLANE))
    TB = max(TB, SUBLANE)

    B_pad = _round_up(B, TB)
    x1_flat = jnp.pad(x1_flat, ((0, B_pad - B), (0, Fp - F)))
    x2_flat = jnp.pad(x2_flat, ((0, B_pad - B), (0, Fp - F)))
    grid = (B_pad // TB,)

    needed = weight_bytes + TB * per_row
    vmem_limit = int(min(max(int(needed * 1.25), 32 * 1024 * 1024), budget))

    if fused:
        flops = 2 * 2 * B_pad * Fp * Cp
        kernel = _fused_kernel
        weight_args = (prepped["wa"], prepped["wb"], prepped["b"])
    else:
        flops = 2 * 2 * B_pad * Fp * Hp + 2 * 2 * B_pad * Hp * Cp
        kernel = _two_stage_kernel
        weight_args = (prepped["w1_t"], prepped["b1"],
                       prepped["w3a"], prepped["w3b"], prepped["b3"])
    bytes_accessed = 2 * B_pad * Fp * x_item + weight_bytes + B_pad * Cp * 4
    cost = pl.CostEstimate(flops=flops, transcendentals=0,
                           bytes_accessed=bytes_accessed)

    x_spec = pl.BlockSpec((TB, Fp), lambda i: (i, 0))
    # Whole-array VMEM operands: copied into VMEM once, no per-step
    # double-buffering (weights stay resident across all grid steps).
    w_spec = pl.BlockSpec(memory_space=pltpu.MemorySpace.VMEM)

    out_padded = pl.pallas_call(
        kernel,
        out_shape=jax.ShapeDtypeStruct((B_pad, Cp), jnp.float32),
        grid=grid,
        in_specs=[x_spec, x_spec] + [w_spec] * len(weight_args),
        out_specs=pl.BlockSpec((TB, Cp), lambda i: (i, 0)),
        compiler_params=pltpu.CompilerParams(
            dimension_semantics=("parallel",),
            vmem_limit_bytes=vmem_limit),
        cost_estimate=cost,
    )(x1_flat, x2_flat, *weight_args)

    # Slice off batch padding and class-lane padding. If a downstream kernel
    # consumes the logits, prefer keeping the lane-dense (B_pad, Cp) slab.
    return out_padded[:B, :C]


# --------------------------- reference / init -------------------------------

def init_params(key, input_dim_1, num_nodes_1, hidden, n_classes):
    """Deterministic nn.Linear-style init (uniform +/- 1/sqrt(fan_in)).

    lin_2 exists in the PyTorch module but is unused by forward, so it is
    omitted here.
    """
    f_in1 = input_dim_1 * num_nodes_1
    k1, k2, k3, k4 = jax.random.split(key, 4)
    bound1 = 1.0 / jnp.sqrt(f_in1)
    bound3 = 1.0 / jnp.sqrt(2 * hidden)
    return {
        "w1": jax.random.uniform(k1, (hidden, f_in1), jnp.float32,
                                 -bound1, bound1),
        "b1": jax.random.uniform(k2, (hidden,), jnp.float32, -bound1, bound1),
        "w3": jax.random.uniform(k3, (n_classes, 2 * hidden), jnp.float32,
                                 -bound3, bound3),
        "b3": jax.random.uniform(k4, (n_classes,), jnp.float32,
                                 -bound3, bound3),
    }


def reference_forward(x1, x2, params):
    """Pure-JAX f32 reference matching the PyTorch forward."""
    B = x1.shape[0]
    inp1 = x1.reshape(B, -1)
    inp2 = x2.reshape(B, -1)
    y1 = inp1 @ params["w1"].T + params["b1"]
    y2 = inp2 @ params["w1"].T + params["b1"]
    out = jnp.concatenate([y1, y2], axis=-1)
    return out @ params["w3"].T + params["b3"]


if __name__ == "__main__":
    # Small shapes: two modalities with matching flattened feature size.
    B = 2
    input_dim_1, num_nodes_1 = 4, 16   # F1 = 64
    input_dim_2, num_nodes_2 = 8, 8    # F2 = 64 (must equal F1, see forward)
    hidden, n_classes = 32, 4

    key = jax.random.PRNGKey(0)
    kx1, kx2, kp = jax.random.split(key, 3)
    x1 = jax.random.normal(kx1, (B, num_nodes_1, input_dim_1), jnp.float32)
    x2 = jax.random.normal(kx2, (B, num_nodes_2, input_dim_2), jnp.float32)
    params = init_params(kp, input_dim_1, num_nodes_1, hidden, n_classes)
    ref = reference_forward(x1, x2, params)

    # Default (affine-fused) path.
    prepped = prepare_params(params)                    # one-time weight prep
    logits = dummy_multimodal_dense2_forward(x1, x2, prepped)
    jax.block_until_ready(logits)
    assert logits.shape == (B, n_classes), logits.shape
    # bf16 operands / f32 accumulation => looser tolerance than pure f32.
    assert jnp.allclose(logits, ref, atol=3e-2, rtol=3e-2), (
        "fused Pallas output mismatch vs reference")

    # Un-fused two-stage path (kept for Cp > Hp / future training mode).
    prepped2 = prepare_params(params, fuse=False)
    logits2 = dummy_multimodal_dense2_forward(x1, x2, prepped2)
    jax.block_until_ready(logits2)
    assert jnp.allclose(logits2, ref, atol=3e-2, rtol=3e-2), (
        "two-stage Pallas output mismatch vs reference")

    print("KERNEL_OK")
</pallas_src>

<mosaic_0001>
module attributes {stable_mosaic.version = 11 : i64} {
  func.func @_fused_kernel(%arg0: i32, %arg1: memref<16x128xf32, #tpu.memory_space<vmem>>, %arg2: memref<16x128xf32, #tpu.memory_space<vmem>>, %arg3: memref<128x128xbf16, #tpu.memory_space<vmem>>, %arg4: memref<128x128xbf16, #tpu.memory_space<vmem>>, %arg5: memref<1x128xf32, #tpu.memory_space<vmem>>, %arg6: memref<16x128xf32, #tpu.memory_space<vmem>>) attributes {dimension_semantics = [#tpu.dimension_semantics<parallel>], iteration_bounds = array<i64: 1>, scalar_prefetch = 0 : i64, scratch_operands = 0 : i64, tpu.core_type = #tpu.core_type<tc>, window_params = [{transform_indices = @transform_0, window_bounds = array<i64: 16, 128>}, {transform_indices = @transform_1, window_bounds = array<i64: 16, 128>}, {pipeline_mode = #tpu.pipeline_mode<synchronous>, transform_indices = @transform_2, window_bounds = array<i64: 128, 128>}, {pipeline_mode = #tpu.pipeline_mode<synchronous>, transform_indices = @transform_3, window_bounds = array<i64: 128, 128>}, {pipeline_mode = #tpu.pipeline_mode<synchronous>, transform_indices = @transform_4, window_bounds = array<i64: 1, 128>}, {transform_indices = @transform_5, window_bounds = array<i64: 16, 128>}]} {
    %c0 = arith.constant 0 : index
    %c0_0 = arith.constant 0 : index
    %0 = vector.load %arg1[%c0, %c0_0] : memref<16x128xf32, #tpu.memory_space<vmem>>, vector<16x128xf32>
    %1 = arith.truncf %0 : vector<16x128xf32> to vector<16x128xbf16>
    %c0_1 = arith.constant 0 : index
    %c0_2 = arith.constant 0 : index
    %2 = vector.load %arg3[%c0_1, %c0_2] : memref<128x128xbf16, #tpu.memory_space<vmem>>, vector<128x128xbf16>
    %cst = arith.constant dense<0.000000e+00> : vector<16x128xf32>
    %3 = tpu.matmul %1, %2, %cst {dimension_numbers = #tpu.dot_dimension_numbers<[1], [0], [0], [1], [0, 0, 1, 1], [], []>} : vector<16x128xbf16>, vector<128x128xbf16>, vector<16x128xf32> -> vector<16x128xf32>
    %c0_3 = arith.constant 0 : index
    %c0_4 = arith.constant 0 : index
    %4 = vector.load %arg2[%c0_3, %c0_4] : memref<16x128xf32, #tpu.memory_space<vmem>>, vector<16x128xf32>
    %5 = arith.truncf %4 : vector<16x128xf32> to vector<16x128xbf16>
    %c0_5 = arith.constant 0 : index
    %c0_6 = arith.constant 0 : index
    %6 = vector.load %arg4[%c0_5, %c0_6] : memref<128x128xbf16, #tpu.memory_space<vmem>>, vector<128x128xbf16>
    %cst_7 = arith.constant dense<0.000000e+00> : vector<16x128xf32>
    %7 = tpu.matmul %5, %6, %cst_7 {dimension_numbers = #tpu.dot_dimension_numbers<[1], [0], [0], [1], [0, 0, 1, 1], [], []>} : vector<16x128xbf16>, vector<128x128xbf16>, vector<16x128xf32> -> vector<16x128xf32>
    %8 = arith.addf %3, %7 : vector<16x128xf32>
    %c0_8 = arith.constant 0 : index
    %c0_9 = arith.constant 0 : index
    %9 = vector.load %arg5[%c0_8, %c0_9] : memref<1x128xf32, #tpu.memory_space<vmem>>, vector<1x128xf32>
    %10 = vector.broadcast %9 : vector<1x128xf32> to vector<16x128xf32>
    %11 = arith.addf %8, %10 : vector<16x128xf32>
    %c0_10 = arith.constant 0 : index
    %c0_11 = arith.constant 0 : index
    %12 = vector.load %arg6[%c0_10, %c0_11] : memref<16x128xf32, #tpu.memory_space<vmem>>, vector<16x128xf32>
    tpu.vector_store %arg6[%c0_10, %c0_11], %11 {strides = array<i32>} : memref<16x128xf32, #tpu.memory_space<vmem>>, vector<16x128xf32>,
    return
  }
  func.func @transform_0(%arg0: i32) -> (i32, i32) {
    %c0_i32 = arith.constant 0 : i32
    %c0_i32_0 = arith.constant 0 : i32
    return %arg0, %c0_i32 : i32, i32
  }
  func.func @transform_1(%arg0: i32) -> (i32, i32) {
    %c0_i32 = arith.constant 0 : i32
    %c0_i32_0 = arith.constant 0 : i32
    return %arg0, %c0_i32 : i32, i32
  }
  func.func @transform_2(%arg0: i32) -> (i32, i32) {
    %c0_i32 = arith.constant 0 : i32
    %c0_i32_0 = arith.constant 0 : i32
    %c0_i32_1 = arith.constant 0 : i32
    return %c0_i32, %c0_i32_0 : i32, i32
  }
  func.func @transform_3(%arg0: i32) -> (i32, i32) {
    %c0_i32 = arith.constant 0 : i32
    %c0_i32_0 = arith.constant 0 : i32
    %c0_i32_1 = arith.constant 0 : i32
    return %c0_i32, %c0_i32_0 : i32, i32
  }
  func.func @transform_4(%arg0: i32) -> (i32, i32) {
    %c0_i32 = arith.constant 0 : i32
    %c0_i32_0 = arith.constant 0 : i32
    %c0_i32_1 = arith.constant 0 : i32
    return %c0_i32, %c0_i32_0 : i32, i32
  }
  func.func @transform_5(%arg0: i32) -> (i32, i32) {
    %c0_i32 = arith.constant 0 : i32
    %c0_i32_0 = arith.constant 0 : i32
    return %arg0, %c0_i32 : i32, i32
  }
}

</mosaic_0001>

<bundles_post_ra>
// kernel: tpu_custom_call.1
= control target key start
LH: loop header
LB: loop body
LE: loop exit
PB: predicated region body
PF: predicated region fallthrough
CT: control target
= control target key end

     0   :  { %10 = vsyncpa [#allocation3], 0  ;;  %s559_s0 = inlined_call_operand.hbm [shape: f32[16,128], index: 0, kind: input, shape index: {}]   ;;  %s560_s1 = inlined_call_operand.hbm [shape: f32[16,128], index: 1, kind: input, shape index: {}]   ;;  %s561_s2 = inlined_call_operand.hbm [shape: bf16[128,128], index: 2, kind: input, shape index: {}]   ;;  %s562_s3 = inlined_call_operand.hbm [shape: bf16[128,128], index: 3, kind: input, shape index: {}]   ;;  %s563_s4 = inlined_call_operand.vmem [shape: f32[1,128], index: 4, kind: input, shape index: {}]   ;;  %s564_s5 = inlined_call_operand.hbm [shape: f32[16,128], index: 5, kind: output, shape index: {}]  }
   0x1   :  { %11 = vsyncpa [#allocation6], 0 }
   0x2   :  { %12 = vsyncpa [#allocation9], 0 }
   0x3   :  { %13 = vsyncpa [#allocation4], 0  ;;  %s31_s20 = sshll.u32 %s560_s1, 4  ;;  %s493_s21 = smov [#allocation5]   ;;  %s32_s20 = int_to_ptr.hbm [resolvable:$true] %s31_s20 }
   0x4   :  { %s33_s22 = sshll.u32 %s493_s21, 4  ;;  %s18_s25 = sshll.u32 %s559_s0, 4  ;;  %s34_s22 = int_to_ptr.vmem [resolvable:$true] %s33_s22  ;;  %s19_s25 = int_to_ptr.hbm [resolvable:$true] %s18_s25 }
   0x5   :  { %s494_s26 = smov 128   ;;  %s495_s27 = smov 8  }
   0x6   :  { %39 = dma.hbm_to_vmem [thread:$0]  %s32_s20, 256, %s34_s22, [#allocation6], %s494_s26, %s494_s26, %s495_s27  }
   0x7   :  { %s496_s28 = smov [#allocation2]   ;;  %s44_s1 = sshll.u32 %s561_s2, 4  ;;  %s45_s1 = int_to_ptr.hbm [resolvable:$true] %s44_s1 }
   0x8   :  { %s20_s29 = sshll.u32 %s496_s28, 4  ;;  %s497_s0 = smov [#allocation7]   ;;  %s21_s29 = int_to_ptr.vmem [resolvable:$true] %s20_s29 }
   0x9   :  { %26 = dma.hbm_to_vmem [thread:$0]  %s19_s25, 256, %s21_s29, [#allocation3], %s494_s26, %s494_s26, %s495_s27  }
   0xa   :  { %s46_s7 = sshll.u32 %s497_s0, 4  ;;  %s57_s10 = sshll.u32 %s562_s3, 4  ;;  %s47_s7 = int_to_ptr.vmem [resolvable:$true] %s46_s7  ;;  %s58_s10 = int_to_ptr.hbm [resolvable:$true] %s57_s10 }
   0xb   :  { %s498_s11 = smov 64   ;;  %s499_s12 = smov 4  }
   0xc   :  { %52 = dma.hbm_to_vmem [thread:$0]  %s45_s1, 1024, %s47_s7, [#allocation6], %s498_s11, %s498_s11, %s499_s12  }
   0xd   :  { %s500_s13 = smov [#allocation8]  }
   0xe   :  { %s59_s14 = sshll.u32 %s500_s13, 4  ;;  %s60_s14 = int_to_ptr.vmem [resolvable:$true] %s59_s14 }
   0xf   :  { %65 = dma.hbm_to_vmem [thread:$0]  %s58_s10, 1024, %s60_s14, [#allocation9], %s498_s11, %s498_s11, %s499_s12  }
  0x10   :  { %485 = dma.done.wait [#allocation3], 256  }
  0x11   :  { %486 = vsyncadd [#allocation3], 4294967040 }
  0x12   :  { %487 = dma.done.wait [#allocation6], 1280  }
  0x13   :  { %488 = vsyncadd [#allocation6], 4294966016 }
  0x14   :  { %489 = dma.done.wait [#allocation9], 1024  }
  0x15   :  { %490 = vsyncadd [#allocation9], 4294966272  ;;  %v354_v0 = vld [vmem:[#allocation8 + $0x38] sm:$0xff]  ;;  %v353_v2 = vld [vmem:[#allocation8 + $0x30] sm:$0xff]  ;;  %s501_s15 = smov [#allocation10]   ;;  %s260_s19 = sshll.u32 %s564_s5, 4  ;;  %s261_s19 = int_to_ptr.hbm [resolvable:$true] %s260_s19 }
  0x16   :  { %v346_v1 = vld [vmem:[#allocation7 + $0x38] sm:$0xff]  ;;  %170 = vmatpush.bf16.msra.mxu0 %v354_v0  ;;  %v345_v3 = vld [vmem:[#allocation7 + $0x30] sm:$0xff]  ;;  %v352_v4 = vld [vmem:[#allocation8 + $0x28] sm:$0xff]  ;;  %s258_s16 = sshll.u32 %s501_s15, 4  ;;  %s259_s16 = int_to_ptr.vmem [resolvable:$true] %s258_s16 }
  0x17   :  { %232 = vmatpush.bf16.msra.mxu1 %v346_v1  ;;  %v344_v5 = vld [vmem:[#allocation7 + $0x28] sm:$0xff]  ;;  %v351_v6 = vld [vmem:[#allocation8 + $0x20] sm:$0xff]  ;;  %v350_v8 = vld [vmem:[#allocation8 + $0x18] sm:$0xff] }
  0x18   :  { %v343_v7 = vld [vmem:[#allocation7 + $0x20] sm:$0xff]  ;;  %v342_v9 = vld [vmem:[#allocation7 + $0x18] sm:$0xff]  ;;  %v349_v10 = vld [vmem:[#allocation8 + $0x10] sm:$0xff] }
  0x19   :  { %v341_v11 = vld [vmem:[#allocation7 + $0x10] sm:$0xff]  ;;  %v348_v12 = vld [vmem:[#allocation8 + $0x8] sm:$0xff]  ;;  %v347_v14 = vld [vmem:[#allocation8] sm:$0xff] }
  0x1a   :  { %171 = vmatpush.bf16.msra.mxu0 %v353_v2  ;;  %v340_v13 = vld [vmem:[#allocation7 + $0x8] sm:$0xff]  ;;  %v339_v15 = vld [vmem:[#allocation7] sm:$0xff]  ;;  %v103_v16 = vld [vmem:[#allocation5] sm:$0xff] }
  0x1b   :  { %233 = vmatpush.bf16.msra.mxu1 %v345_v3  ;;  %v104_v17 = vld [vmem:[#allocation5 + $0x8] sm:$0xff]  ;;  %v84_v18 = vld [vmem:[#allocation2] sm:$0xff]  ;;  %v85_v19 = vld [vmem:[#allocation2 + $0x8] sm:$0xff] }
  0x1c   :  { %v105_v20 = vpack.c.bf16 %v104_v17, %v103_v16  ;;  %v86_v21 = vpack.c.bf16 %v85_v19, %v84_v18  ;;  %v364_v22 = vld [vmem:[%s563_s4] ss:$0 sm:$0xff] }
  0x1e   :  { %172 = vmatpush.bf16.msra.mxu0 %v352_v4 }
  0x1f   :  { %234 = vmatpush.bf16.msra.mxu1 %v344_v5 }
  0x22   :  { %173 = vmatpush.bf16.msra.mxu0 %v351_v6 }
  0x23   :  { %235 = vmatpush.bf16.msra.mxu1 %v343_v7 }
  0x26   :  { %174 = vmatpush.bf16.msra.mxu0 %v350_v8 }
  0x27   :  { %236 = vmatpush.bf16.msra.mxu1 %v342_v9 }
  0x2a   :  { %175 = vmatpush.bf16.msra.mxu0 %v349_v10 }
  0x2b   :  { %237 = vmatpush.bf16.msra.mxu1 %v341_v11 }
  0x2e   :  { %176 = vmatpush.bf16.msra.mxu0 %v348_v12 }
  0x2f   :  { %238 = vmatpush.bf16.msra.mxu1 %v340_v13 }
  0x32   :  { %177 = vmatpush.bf16.msra.mxu0 %v347_v14 }
  0x33   :  { %239 = vmatpush.bf16.msra.mxu1 %v339_v15 }
  0x35   :  { %178 = vmatmul.bf16.vlgmr.msra.gmra.mxu0 %v105_v20 }
  0x36   :  { %240 = vmatmul.bf16.vlgmr.msra.gmra.mxu1 %v86_v21 }
  0xb2   :  { %v179_v23 = vpop.f32.mrf.mxu0 }
  0xb3   :  { %v241_v24 = vpop.f32.mrf.mxu1 }
  0xb4   :  { %v242_v25 = vadd.f32 %v241_v24, %v179_v23 }
  0xb6   :  { %v250_v26 = vadd.f32 %v364_v22, %v242_v25 }
  0xb8   :  { %252 = vst [vmem:[#allocation10] sm:$0xff] %v250_v26 }
  0xba   :  { %v181_v27 = vpop.f32.mrf.mxu0 }
  0xbb   :  { %v243_v28 = vpop.f32.mrf.mxu1 }
  0xbc   :  { %v244_v29 = vadd.f32 %v243_v28, %v181_v27 }
  0xbe   :  { %v251_v30 = vadd.f32 %v364_v22, %v244_v29 }
  0xc0   :  { %253 = vst [vmem:[#allocation10 + $0x8] sm:$0xff] %v251_v30 }
  0xc1   :  { %266 = dma.vmem_to_hbm [thread:$0]  %s259_s16, 256, %s261_s19, [#allocation4], %s494_s26, %s494_s26, %s495_s27  }
  0xc2   :  { %491 = dma.done.wait [#allocation4], 256  }
  0xc3   :  { %492 = vsyncadd [#allocation4], 4294967040 }
  0xc4   :  { %271 = vsyncpa [#allocation3], 1 }
  0xc5   :  { %272 = vsyncpa [#allocation6], 1 }
  0xc6   :  { %273 = vsyncpa [#allocation9], 1 }
  0xc7   :  { %274 = vsyncpa [#allocation4], 1 }

</bundles_post_ra>
